<compile_context>
chip_gen: v7x
topology: tpu7x:2x2x1
jax: 0.10.0
libtpu: 0.0.40
codegen_flags: <defaults>
</compile_context>

<pallas_src>
import jax
import jax.numpy as jnp
from jax.experimental import pallas as pl
from jax.experimental.pallas import tpu as pltpu


def _round_up(x, m):
    return (x + m - 1) // m * m


# ---------------------------------------------------------------------------
# Kernel: two MXU matmuls (bf16 operands, f32 accumulation).  BN (inference
# stats) and b1 are already folded into W1/b1 outside the kernel.  Grid is
# (batch tiles, class tiles); h is computed once per batch tile (at j == 0)
# into a VMEM scratch and reused across class tiles.
# ---------------------------------------------------------------------------
def classblock_kernel(x_ref, w1_ref, b1_ref, w2_ref, b2_ref, out_ref, h_ref):
    @pl.when(pl.program_id(1) == 0)
    def _():
        # Cast the f32 x tile to bf16 on the VPU (free filler slots) so the
        # wrapper does not stream a separate casted copy of x through HBM.
        xb = x_ref[...].astype(jnp.bfloat16)
        h_ref[...] = jnp.dot(xb, w1_ref[...],
                             preferred_element_type=jnp.float32) + b1_ref[...]

    logits = jnp.dot(h_ref[...].astype(jnp.bfloat16), w2_ref[...],
                     preferred_element_type=jnp.float32) + b2_ref[...]
    out_ref[...] = logits.astype(out_ref.dtype)


# ---------------------------------------------------------------------------
# One-time parameter preparation (do this at model-load time, not per call).
# ---------------------------------------------------------------------------
def prepare_class_block_params(params, *, max_tile_n=2048):
    """Fold BN into linear-1, pad the class dim, cast weights to bf16."""
    w1, b1 = params["w1"], params["b1"]              # [D_in, B], [1, B]
    w2, b2 = params["w2"], params["b2"]              # [B, C],    [1, C]
    gamma, beta = params["gamma"], params["beta"]
    r_mean, r_var = params["running_mean"], params["running_var"]
    eps = params["eps"]

    D_in, B = w1.shape
    C = w2.shape[1]

    scale = gamma / jnp.sqrt(r_var + eps)            # [1, B]
    shift = beta - r_mean * scale                    # [1, B]
    w1_bf = (w1 * scale).astype(jnp.bfloat16)        # BN + b1 folded into W1'
    b1_fold = (b1 * scale + shift).astype(jnp.float32)

    # Class-dim padding: lane-dense (128); prefer a 256 multiple (v6e/v7x MXU
    # column width) when nearly free; keep it a multiple of the class tile.
    Cp = _round_up(C, 128)
    Cp256 = _round_up(C, 256)
    if Cp % 256 != 0 and (Cp256 - Cp) <= Cp // 8:
        Cp = Cp256
    tile_n = Cp if Cp <= max_tile_n else max_tile_n
    Cp = _round_up(Cp, tile_n)

    w2_bf = jnp.pad(w2, ((0, 0), (0, Cp - C))).astype(jnp.bfloat16)
    b2_pad = jnp.pad(b2, ((0, 0), (0, Cp - C))).astype(jnp.float32)

    return {"w1_bf": w1_bf, "b1_fold": b1_fold,
            "w2_bf": w2_bf, "b2_pad": b2_pad,
            "D_in": D_in, "B": B, "C": C, "Cp": Cp, "tile_n": tile_n}


# ---------------------------------------------------------------------------
# Forward pass.
# ---------------------------------------------------------------------------
def class_block_forward(x, prepared, *, tile_m=512, out_dtype=None):
    """x: [N, D_in] float32; `prepared` from prepare_class_block_params.
    Returns logits [N, class_num]."""
    N, D_in = x.shape
    assert D_in == prepared["D_in"], "input_dim mismatch"
    B, C, Cp = prepared["B"], prepared["C"], prepared["Cp"]
    tile_n = prepared["tile_n"]
    w1_bf, b1_fold = prepared["w1_bf"], prepared["b1_fold"]
    w2_bf, b2_pad = prepared["w2_bf"], prepared["b2_pad"]

    out_dtype = x.dtype if out_dtype is None else out_dtype
    out_bytes = jnp.dtype(out_dtype).itemsize

    # --- batch tiling ---------------------------------------------------------
    if N < 128:
        # Serving batches: no padding to 128 rows (sublane only needs 8/16).
        tile_m = _round_up(max(N, 1), 16)
    else:
        tile_m = _round_up(max(128, min(tile_m, _round_up(N, 128))), 128)

    # --- VMEM budget, clamped to what the device actually has ---------------
    try:
        vmem_cap = int(pltpu.get_tpu_info().vmem_capacity_bytes)
    except Exception:
        vmem_cap = 64 * 1024 * 1024          # conservative (v7x per-TC)
    budget = int(vmem_cap * 0.75)

    def vmem_needed(tm, tn):
        return (2 * tm * D_in * 4                    # x tiles (f32), 2 bufs
                + 2 * (D_in * B * 2 + B * 4)         # W1 (bf16) + b1 (f32)
                + 2 * (B * tn * 2 + tn * 4)          # W2 tile (bf16) + b2 (f32)
                + 2 * tm * tn * out_bytes            # out tiles
                + tm * B * 4)                        # h scratch (f32)

    while vmem_needed(tile_m, tile_n) > budget:
        if tile_m > 128:
            tile_m = max(128, tile_m // 2)
        elif tile_n > 256 and tile_n % 256 == 0:
            tile_n //= 2                             # still divides Cp, still 128-mult
        else:
            break

    Np = _round_up(N, tile_m)
    x_p = x if Np == N else jnp.pad(x, ((0, Np - N), (0, 0)))

    grid = (Np // tile_m, Cp // tile_n)

    # Cost hint for the XLA scheduler (real dtypes: f32 x read, out_dtype write).
    flops = 2 * Np * D_in * B + 2 * Np * B * Cp
    bytes_accessed = (Np * D_in * 4 + D_in * B * 2 + B * 4
                      + B * Cp * 2 + Cp * 4 + Np * Cp * out_bytes)
    cost = pl.CostEstimate(flops=int(flops), transcendentals=0,
                           bytes_accessed=int(bytes_accessed))

    needed = vmem_needed(tile_m, tile_n)
    vmem_limit = min(max(32 * 1024 * 1024, int(needed * 1.3)),
                     int(vmem_cap * 0.9))

    out_p = pl.pallas_call(
        classblock_kernel,
        out_shape=jax.ShapeDtypeStruct((Np, Cp), out_dtype),
        grid_spec=pltpu.PrefetchScalarGridSpec(
            num_scalar_prefetch=0,
            grid=grid,
            in_specs=[
                pl.BlockSpec((tile_m, D_in), lambda i, j: (i, 0)),   # x (f32)
                pl.BlockSpec((D_in, B), lambda i, j: (0, 0)),        # W1 folded (bf16)
                pl.BlockSpec((1, B), lambda i, j: (0, 0)),           # b1 folded (f32)
                pl.BlockSpec((B, tile_n), lambda i, j: (0, j)),      # W2 (bf16)
                pl.BlockSpec((1, tile_n), lambda i, j: (0, j)),      # b2 (f32)
            ],
            out_specs=pl.BlockSpec((tile_m, tile_n), lambda i, j: (i, j)),
            scratch_shapes=[pltpu.VMEM((tile_m, B), jnp.float32)],   # h
        ),
        compiler_params=pltpu.CompilerParams(
            dimension_semantics=("parallel", "arbitrary"),
            vmem_limit_bytes=vmem_limit),
        cost_estimate=cost,
    )(x_p, w1_bf, b1_fold, w2_bf, b2_pad)

    return out_p[:N, :C]


# ---------------------------------------------------------------------------
# Init matching weights_init_kaiming / weights_init_classifier, plus refs.
# ---------------------------------------------------------------------------
def init_class_block_params(key, input_dim, class_num, num_bottleneck=512,
                            dtype=jnp.float32):
    k1, k2, k3 = jax.random.split(key, 3)
    # nn.Linear(input_dim, num_bottleneck): kaiming_normal_ fan_out, a=0; bias=0.
    std1 = (2.0 / num_bottleneck) ** 0.5
    w1_t = jax.random.normal(k1, (num_bottleneck, input_dim), dtype) * std1
    b1 = jnp.zeros((1, num_bottleneck), dtype)
    # BatchNorm1d: gamma ~ N(1, 0.02), beta = 0, running stats at defaults.
    gamma = 1.0 + 0.02 * jax.random.normal(k2, (1, num_bottleneck), dtype)
    beta = jnp.zeros((1, num_bottleneck), dtype)
    r_mean = jnp.zeros((1, num_bottleneck), dtype)
    r_var = jnp.ones((1, num_bottleneck), dtype)
    # classifier nn.Linear(num_bottleneck, class_num): N(0, 0.001), bias = 0.
    w2_t = 0.001 * jax.random.normal(k3, (class_num, num_bottleneck), dtype)
    b2 = jnp.zeros((1, class_num), dtype)
    return {
        "w1": w1_t.T,            # [D_in, B]
        "b1": b1,
        "gamma": gamma, "beta": beta,
        "running_mean": r_mean, "running_var": r_var,
        "eps": jnp.float32(1e-5),
        "w2": w2_t.T,            # [B, C]
        "b2": b2,
    }


def class_block_reference(x, params):
    """Plain-JAX f32 reference of the module's inference semantics."""
    h = x @ params["w1"] + params["b1"]
    scale = params["gamma"] / jnp.sqrt(params["running_var"] + params["eps"])
    shift = params["beta"] - params["running_mean"] * scale
    h = h * scale + shift
    return h @ params["w2"] + params["b2"]


def class_block_reference_bf16(x, params):
    """Reference using the same bf16-operand / f32-accumulate path as the kernel."""
    scale = params["gamma"] / jnp.sqrt(params["running_var"] + params["eps"])
    shift = params["beta"] - params["running_mean"] * scale
    w1_fold = (params["w1"] * scale).astype(jnp.bfloat16)
    b1_fold = params["b1"] * scale + shift
    h = jnp.dot(x.astype(jnp.bfloat16), w1_fold,
                preferred_element_type=jnp.float32) + b1_fold
    logits = jnp.dot(h.astype(jnp.bfloat16), params["w2"].astype(jnp.bfloat16),
                     preferred_element_type=jnp.float32) + params["b2"]
    return logits


if __name__ == "__main__":
    # Small shapes consistent with ClassBlock's 2-D input [N, input_dim].
    N, input_dim, num_bottleneck, class_num = 16, 32, 64, 24

    key = jax.random.PRNGKey(0)
    kx, kp = jax.random.split(key)
    x = jax.random.normal(kx, (N, input_dim), jnp.float32)
    params = init_class_block_params(kp, input_dim, class_num, num_bottleneck)

    prepared = prepare_class_block_params(params)    # once, at "model load"
    out = class_block_forward(x, prepared)
    out = jax.block_until_ready(out)
    assert out.shape == (N, class_num)

    # Tight check vs. a reference that uses the identical bf16/f32 mixed path.
    ref_bf = class_block_reference_bf16(x, params)
    assert jnp.allclose(out, ref_bf, atol=1e-4, rtol=1e-3), "mismatch vs bf16 ref"

    # Loose check vs. the full-f32 module semantics (bf16 operand rounding).
    ref32 = class_block_reference(x, params)
    assert jnp.allclose(out, ref32, atol=2e-2, rtol=2e-2), "mismatch vs f32 ref"

    print("KERNEL_OK")
</pallas_src>

<mosaic_0001>
module attributes {stable_mosaic.version = 11 : i64} {
  func.func @classblock_kernel(%arg0: i32, %arg1: i32, %arg2: memref<16x32xf32, #tpu.memory_space<vmem>>, %arg3: memref<32x64xbf16, #tpu.memory_space<vmem>>, %arg4: memref<1x64xf32, #tpu.memory_space<vmem>>, %arg5: memref<64x128xbf16, #tpu.memory_space<vmem>>, %arg6: memref<1x128xf32, #tpu.memory_space<vmem>>, %arg7: memref<16x128xf32, #tpu.memory_space<vmem>>, %arg8: memref<16x64xf32, #tpu.memory_space<vmem>>) attributes {dimension_semantics = [#tpu.dimension_semantics<parallel>, #tpu.dimension_semantics<arbitrary>], iteration_bounds = array<i64: 1, 1>, scalar_prefetch = 0 : i64, scratch_operands = 1 : i64, tpu.core_type = #tpu.core_type<tc>, window_params = [{transform_indices = @transform_0, window_bounds = array<i64: 16, 32>}, {pipeline_mode = #tpu.pipeline_mode<synchronous>, transform_indices = @transform_1, window_bounds = array<i64: 32, 64>}, {pipeline_mode = #tpu.pipeline_mode<synchronous>, transform_indices = @transform_2, window_bounds = array<i64: 1, 64>}, {transform_indices = @transform_3, window_bounds = array<i64: 64, 128>}, {transform_indices = @transform_4, window_bounds = array<i64: 1, 128>}, {transform_indices = @transform_5, window_bounds = array<i64: 16, 128>}]} {
    %c0_i32 = arith.constant 0 : i32
    %0 = arith.cmpi eq, %arg1, %c0_i32 : i32
    %1 = arith.extui %0 : i1 to i32
    %c0_i32_0 = arith.constant 0 : i32
    %2 = arith.cmpi ne, %1, %c0_i32_0 : i32
    scf.if %2 {
      %c0_8 = arith.constant 0 : index
      %c0_9 = arith.constant 0 : index
      %11 = vector.load %arg2[%c0_8, %c0_9] : memref<16x32xf32, #tpu.memory_space<vmem>>, vector<16x32xf32>
      %12 = arith.truncf %11 : vector<16x32xf32> to vector<16x32xbf16>
      %c0_10 = arith.constant 0 : index
      %c0_11 = arith.constant 0 : index
      %13 = vector.load %arg3[%c0_10, %c0_11] : memref<32x64xbf16, #tpu.memory_space<vmem>>, vector<32x64xbf16>
      %cst_12 = arith.constant dense<0.000000e+00> : vector<16x64xf32>
      %14 = tpu.matmul %12, %13, %cst_12 {dimension_numbers = #tpu.dot_dimension_numbers<[1], [0], [0], [1], [0, 0, 1, 1], [], []>} : vector<16x32xbf16>, vector<32x64xbf16>, vector<16x64xf32> -> vector<16x64xf32>
      %c0_13 = arith.constant 0 : index
      %c0_14 = arith.constant 0 : index
      %15 = vector.load %arg4[%c0_13, %c0_14] : memref<1x64xf32, #tpu.memory_space<vmem>>, vector<1x64xf32>
      %16 = vector.broadcast %15 : vector<1x64xf32> to vector<16x64xf32>
      %17 = arith.addf %14, %16 : vector<16x64xf32>
      %c0_15 = arith.constant 0 : index
      %c0_16 = arith.constant 0 : index
      %18 = vector.load %arg8[%c0_15, %c0_16] : memref<16x64xf32, #tpu.memory_space<vmem>>, vector<16x64xf32>
      tpu.vector_store %arg8[%c0_15, %c0_16], %17 {strides = array<i32>} : memref<16x64xf32, #tpu.memory_space<vmem>>, vector<16x64xf32>,
    } else {
    }
    %c0 = arith.constant 0 : index
    %c0_1 = arith.constant 0 : index
    %3 = vector.load %arg8[%c0, %c0_1] : memref<16x64xf32, #tpu.memory_space<vmem>>, vector<16x64xf32>
    %4 = arith.truncf %3 : vector<16x64xf32> to vector<16x64xbf16>
    %c0_2 = arith.constant 0 : index
    %c0_3 = arith.constant 0 : index
    %5 = vector.load %arg5[%c0_2, %c0_3] : memref<64x128xbf16, #tpu.memory_space<vmem>>, vector<64x128xbf16>
    %cst = arith.constant dense<0.000000e+00> : vector<16x128xf32>
    %6 = tpu.matmul %4, %5, %cst {dimension_numbers = #tpu.dot_dimension_numbers<[1], [0], [0], [1], [0, 0, 1, 1], [], []>} : vector<16x64xbf16>, vector<64x128xbf16>, vector<16x128xf32> -> vector<16x128xf32>
    %c0_4 = arith.constant 0 : index
    %c0_5 = arith.constant 0 : index
    %7 = vector.load %arg6[%c0_4, %c0_5] : memref<1x128xf32, #tpu.memory_space<vmem>>, vector<1x128xf32>
    %8 = vector.broadcast %7 : vector<1x128xf32> to vector<16x128xf32>
    %9 = arith.addf %6, %8 : vector<16x128xf32>
    %c0_6 = arith.constant 0 : index
    %c0_7 = arith.constant 0 : index
    %10 = vector.load %arg7[%c0_6, %c0_7] : memref<16x128xf32, #tpu.memory_space<vmem>>, vector<16x128xf32>
    tpu.vector_store %arg7[%c0_6, %c0_7], %9 {strides = array<i32>} : memref<16x128xf32, #tpu.memory_space<vmem>>, vector<16x128xf32>,
    return
  }
  func.func @transform_0(%arg0: i32, %arg1: i32) -> (i32, i32) {
    %c0_i32 = arith.constant 0 : i32
    %c0_i32_0 = arith.constant 0 : i32
    return %arg0, %c0_i32 : i32, i32
  }
  func.func @transform_1(%arg0: i32, %arg1: i32) -> (i32, i32) {
    %c0_i32 = arith.constant 0 : i32
    %c0_i32_0 = arith.constant 0 : i32
    %c0_i32_1 = arith.constant 0 : i32
    return %c0_i32, %c0_i32_0 : i32, i32
  }
  func.func @transform_2(%arg0: i32, %arg1: i32) -> (i32, i32) {
    %c0_i32 = arith.constant 0 : i32
    %c0_i32_0 = arith.constant 0 : i32
    %c0_i32_1 = arith.constant 0 : i32
    return %c0_i32, %c0_i32_0 : i32, i32
  }
  func.func @transform_3(%arg0: i32, %arg1: i32) -> (i32, i32) {
    %c0_i32 = arith.constant 0 : i32
    %c0_i32_0 = arith.constant 0 : i32
    return %c0_i32, %arg1 : i32, i32
  }
  func.func @transform_4(%arg0: i32, %arg1: i32) -> (i32, i32) {
    %c0_i32 = arith.constant 0 : i32
    %c0_i32_0 = arith.constant 0 : i32
    return %c0_i32, %arg1 : i32, i32
  }
  func.func @transform_5(%arg0: i32, %arg1: i32) -> (i32, i32) {
    %c0_i32 = arith.constant 0 : i32
    return %arg0, %arg1 : i32, i32
  }
}

</mosaic_0001>

<bundles_post_ra>
// kernel: tpu_custom_call.1
= control target key start
LH: loop header
LB: loop body
LE: loop exit
PB: predicated region body
PF: predicated region fallthrough
CT: control target
= control target key end

     0   :  { %10 = vsyncpa [#allocation4], 0  ;;  %s502_s0 = inlined_call_operand.hbm [shape: f32[16,32], index: 0, kind: input, shape index: {}]   ;;  %s503_s1 = inlined_call_operand.hbm [shape: bf16[32,64], index: 1, kind: input, shape index: {}]   ;;  %s504_s2 = inlined_call_operand.vmem [shape: f32[1,64], index: 2, kind: input, shape index: {}]   ;;  %s505_s3 = inlined_call_operand.hbm [shape: bf16[64,128], index: 3, kind: input, shape index: {}]   ;;  %s506_s4 = inlined_call_operand.vmem [shape: f32[1,128], index: 4, kind: input, shape index: {}]   ;;  %s507_s5 = inlined_call_operand.hbm [shape: f32[16,128], index: 5, kind: output, shape index: {}]  }
   0x1   :  { %11 = vsyncpa [#allocation7], 0 }
   0x2   :  { %12 = vsyncpa [#allocation5], 0  ;;  %s396_s18 = smov [#allocation6]   ;;  %s302_s22 = scalar_lea.hbm %s503_s1, 256 }
   0x3   :  { %s30_s19 = sshll.u32 %s396_s18, 4  ;;  %p303_p0 = scmp.ne.s32.totalorder %s503_s1, %s302_s22  ;;  %s31_s19 = int_to_ptr.vmem [resolvable:$true] %s30_s19 }
   0x4   :  { %p306_p1 = scmp.lt.u32.totalorder %s302_s22, %s503_s1 }
   0x6   :  { %p308_p2 = pnand %p306_p1, %p303_p0 }
   0x8   :  { %311 = shalt.err (!%p308_p2)
}
   0x9   :  { %s312_s27 = scalar_lea.vmem %s31_s19, 256  ;;  %p317_p4 = scmp.lt.s32.totalorder %s31_s19, %s31_s19 }
   0xa   :  { %p313_p3 = scmp.ne.s32.totalorder %s31_s19, %s312_s27  ;;  %p318_p5 = scmp.lt.s32.totalorder %s312_s27, %s312_s27 }
   0xc   :  { %p319_p6 = por %p318_p5, %p317_p4 }
   0xe   :  { %p320_p7 = pnand %p319_p6, %p313_p3 }
  0x10   :  { %323 = shalt.err (!%p320_p7)
}
  0x11   :  { %s397_s28 = smov 64   ;;  %s398_s29 = smov 4  }
  0x12   :  { %36 = dma.hbm_to_vmem [thread:$0]  %s503_s1, 256, %s31_s19, [#allocation7], %s397_s28, %s397_s28, %s398_s29  }
  0x13   :  { %s399_s7 = smov [#allocation3]   ;;  %s324_s11 = scalar_lea.hbm %s502_s0, 256 }
  0x14   :  { %s18_s8 = sshll.u32 %s399_s7, 4  ;;  %p325_p8 = scmp.ne.s32.totalorder %s502_s0, %s324_s11  ;;  %s19_s8 = int_to_ptr.vmem [resolvable:$true] %s18_s8 }
  0x15   :  { %p328_p9 = scmp.lt.u32.totalorder %s324_s11, %s502_s0 }
  0x17   :  { %p330_p10 = pnand %p328_p9, %p325_p8 }
  0x19   :  { %333 = shalt.err (!%p330_p10)
}
  0x1a   :  { %s334_s16 = scalar_lea.vmem %s19_s8, 256  ;;  %p339_p12 = scmp.lt.s32.totalorder %s19_s8, %s19_s8 }
  0x1b   :  { %p335_p11 = scmp.ne.s32.totalorder %s19_s8, %s334_s16  ;;  %p340_p13 = scmp.lt.s32.totalorder %s334_s16, %s334_s16 }
  0x1d   :  { %p341_p0 = por %p340_p13, %p339_p12 }
  0x1f   :  { %p342_p1 = pnand %p341_p0, %p335_p11 }
  0x21   :  { %345 = shalt.err (!%p342_p1)
}
  0x22   :  { %s400_s1 = smov 128   ;;  %s401_s17 = smov 8  }
  0x23   :  { %24 = dma.hbm_to_vmem [thread:$0]  %s502_s0, 256, %s19_s8, [#allocation4], %s400_s1, %s400_s1, %s401_s17  }
  0x24   :  { %s402_s20 = smov [#allocation8]   ;;  %s346_s24 = scalar_lea.hbm %s505_s3, 512 }
  0x25   :  { %s44_s21 = sshll.u32 %s402_s20, 4  ;;  %p347_p2 = scmp.ne.s32.totalorder %s505_s3, %s346_s24  ;;  %s45_s21 = int_to_ptr.vmem [resolvable:$true] %s44_s21 }
  0x26   :  { %p350_p3 = scmp.lt.u32.totalorder %s346_s24, %s505_s3 }
  0x28   :  { %p352_p4 = pnand %p350_p3, %p347_p2 }
  0x2a   :  { %355 = shalt.err (!%p352_p4)
}
  0x2b   :  { %s356_s6 = scalar_lea.vmem %s45_s21, 512  ;;  %p361_p6 = scmp.lt.s32.totalorder %s45_s21, %s45_s21 }
  0x2c   :  { %p357_p5 = scmp.ne.s32.totalorder %s45_s21, %s356_s6  ;;  %p362_p7 = scmp.lt.s32.totalorder %s356_s6, %s356_s6 }
  0x2e   :  { %p363_p8 = por %p362_p7, %p361_p6 }
  0x30   :  { %p364_p9 = pnand %p363_p8, %p357_p5 }
  0x32   :  { %367 = shalt.err (!%p364_p9)
}
  0x33   :  { %50 = dma.hbm_to_vmem [thread:$0]  %s505_s3, 512, %s45_s21, [#allocation7], %s397_s28, %s397_s28, %s398_s29  }
  0x34   :  { %390 = dma.done.wait [#allocation4], 256  }
  0x35   :  { %391 = vsyncadd [#allocation4], 4294967040 }
  0x36   :  { %392 = dma.done.wait [#allocation7], 768  }
  0x37   :  { %393 = vsyncadd [#allocation7], 4294966528  ;;  %v403_v0 = vmov 0.0   ;;  %vm404_vm0 = vmmov 0   ;;  %v296_v1 = vld [vmem:[#allocation6] sm:$0xff]   ;;  %v297_v2 = vld [vmem:[#allocation6 + $0x8] sm:$0xff]  }
  0x38   :  { %266 = vmatprep.subr.bf16.mxu0 %v403_v0  ;;  %270 = vmatprep.mubr.msk.bf16.mxu0 %vm404_vm0, %v403_v0  ;;  %v67_v3 = vld [vmem:[#allocation3] sm:$0xff]  ;;  %v68_v4 = vld [vmem:[#allocation3 + $0x8] sm:$0xff]  ;;  %vm93_vm1 = vcmask 261120   ;;  %v300_v8 = vld [vmem:[#allocation8 + $0x10] sm:$0xff]   ;;  %vm138_vm2 = vcmask 523264   ;;  %s405_s9 = smov [#allocation9]  }
  0x39   :  { %274 = vmatprep.subr.bf16.mxu1 %v403_v0  ;;  %282 = vmatprep.mubr.msk.bf16.mxu1 %vm404_vm0, %v403_v0  ;;  %v69_v5 = vpack.c.bf16 %v68_v4, %v67_v3  ;;  %v298_v6 = vld [vmem:[#allocation8] sm:$0xff]   ;;  %v299_v7 = vld [vmem:[#allocation8 + $0x8] sm:$0xff]   ;;  %v301_v9 = vld [vmem:[#allocation8 + $0x18] sm:$0xff]  }
  0x3a   :  { %267 = vmatpush3.bf16.msra.mxu0 %v296_v1  ;;  %275 = vmatpush3.bf16.msra.mxu1 %v298_v6  ;;  %v248_v10 = vld [vmem:[%s504_s2] ss:$0 sm:$0xff]  ;;  %s235_s2 = sshll.u32 %s405_s9, 4  ;;  %s236_s2 = int_to_ptr.vmem [resolvable:$true] %s235_s2 }
  0x3b   :  { %268 = vmatprep.subr.bf16.mxu0 %v403_v0  ;;  %276 = vmatprep.subr.bf16.mxu1 %v403_v0  ;;  %v252_v20 = vld [vmem:[%s506_s4] ss:$0 sm:$0xff]  ;;  %s368_s10 = scalar_lea.vmem %s236_s2, 256  ;;  %p373_p11 = scmp.lt.s32.totalorder %s236_s2, %s236_s2 }
  0x3c   :  { %p369_p10 = scmp.ne.s32.totalorder %s236_s2, %s368_s10  ;;  %p374_p12 = scmp.lt.s32.totalorder %s368_s10, %s368_s10 }
  0x3e   :  { %269 = vmatpush3.bf16.msra.mxu0 %v297_v2  ;;  %277 = vmatpush3.bf16.msra.mxu1 %v299_v7  ;;  %p375_p13 = por %p374_p12, %p373_p11 }
  0x3f   :  { %278 = vmatprep.subr.bf16.mxu1 %v403_v0 }
  0x40   :  { %p376_p0 = pnand %p375_p13, %p369_p10 }
  0x41   :  { %271 = vmatmul.mubr.msk.bf16.vlgmr.msra.gmra.mrb[0].mxu0 %vm93_vm1, %v69_v5 }
  0x42   :  { %279 = vmatpush3.bf16.msra.mxu1 %v300_v8 }
  0x43   :  { %280 = vmatprep.subr.bf16.mxu1 %v403_v0 }
  0x46   :  { %281 = vmatpush3.bf16.msra.mxu1 %v301_v9 }
 0x114   :  { %v131_v11 = vpop.f32.mrb[0].mxu0 }
 0x115   :  { %v132_v12 = vadd.f32 %v248_v10, %v131_v11  ;;  %v272_v13 = vpop.f32.mrb[1].mxu0 }
 0x116   :  { %v134_v14 = vpop.f32.mrb[2].mxu0 }
 0x117   :  { %v135_v15 = vadd.f32 %v248_v10, %v134_v14  ;;  %v273_v16 = vpop.f32.mrb[3].mxu0  ;;  %139 = vst.msk [vmem:[#allocation2] sm:$0xff] %vm138_vm2, %v132_v12 }
 0x119   :  { %140 = vst.msk [vmem:[#allocation2 + $0x8] sm:$0xff] %vm138_vm2, %v135_v15 }
 0x11e   :  { %v141_v17 = vld [vmem:[#allocation2] sm:$0xff] }
 0x120   :  { %v142_v18 = vld [vmem:[#allocation2 + $0x8] sm:$0xff] }
 0x121   :  { %v143_v19 = vpack.c.bf16 %v142_v18, %v141_v17 }
 0x123   :  { %283 = vmatmul.mubr.msk.bf16.vlgmr.msra.gmra.mrb[0].mxu1 %vm138_vm2, %v143_v19 }
 0x1f6   :  { %v221_v21 = vpop.f32.mrb[0].mxu1 }
 0x1f7   :  { %v222_v22 = vadd.f32 %v252_v20, %v221_v21  ;;  %v284_v23 = vpop.f32.mrb[1].mxu1 }
 0x1f8   :  { %v224_v24 = vpop.f32.mrb[2].mxu1 }
 0x1f9   :  { %228 = vst [vmem:[#allocation9] sm:$0xff] %v222_v22  ;;  %v225_v25 = vadd.f32 %v252_v20, %v224_v24  ;;  %v285_v26 = vpop.f32.mrb[3].mxu1 }
 0x1fb   :  { %229 = vst [vmem:[#allocation9 + $0x8] sm:$0xff] %v225_v25 }
 0x1fc   :  { %379 = shalt.err (!%p376_p0)
}
 0x1fd   :  { %s380_s12 = scalar_lea.hbm %s507_s5, 256 }
 0x1fe   :  { %p381_p1 = scmp.ne.s32.totalorder %s507_s5, %s380_s12  ;;  %p384_p2 = scmp.lt.u32.totalorder %s380_s12, %s507_s5 }
 0x200   :  { %p386_p3 = pnand %p384_p2, %p381_p1 }
 0x202   :  { %389 = shalt.err (!%p386_p3)
}
 0x203   :  { %241 = dma.vmem_to_hbm [thread:$0]  %s236_s2, 256, %s507_s5, [#allocation5], %s400_s1, %s400_s1, %s401_s17  }
 0x204   :  { %394 = dma.done.wait [#allocation5], 256  }
 0x205   :  { %395 = vsyncadd [#allocation5], 4294967040 }
 0x206   :  { %245 = vsyncpa [#allocation4], 1 }
 0x207   :  { %246 = vsyncpa [#allocation7], 1 }
 0x208   :  { %247 = vsyncpa [#allocation5], 1 }

</bundles_post_ra>
